<compile_context>
chip_gen: v7x
topology: tpu7x:2x2x1
jax: 0.10.0
libtpu: 0.0.40
codegen_flags: <defaults>
</compile_context>

<pallas_src>
import functools
import math

import jax
import jax.numpy as jnp
from jax import lax
from jax.experimental import pallas as pl
from jax.experimental.pallas import tpu as pltpu

EPS = 1e-5

_MAX_TILE_ROWS = 8192        # raised so the byte target controls tile size
_MAX_PACK_GROUP = 16         # most original rows folded into one packed row
_MAX_PACK_WIDTH = 1024       # widest packed lane dimension we will create


def _sublane_pack(dtype):
    """Rows per sublane packing unit: 8 (4B), 16 (2B), 32 (1B dtypes)."""
    itemsize = jnp.dtype(dtype).itemsize
    return max(8, 32 // max(1, itemsize))


@functools.lru_cache(maxsize=None)
def _chip_config():
    """(target_tile_bytes, vmem_limit_bytes, single_pass_var) gated on chip class."""
    try:
        info = pltpu.get_tpu_info()
        vmem = int(getattr(info, "vmem_capacity_bytes", 0)) or None
    except Exception:                      # non-TPU backend / older API — be conservative
        vmem = None
    if vmem is not None and vmem <= 80 * 1024 * 1024:
        # v7x-class: 64 MiB VMEM per TC, 3.2 TB/s HBM -> modest tiles, trim VALU ops.
        return (2 * 1024 * 1024, 32 * 1024 * 1024, True)
    if vmem is not None:
        # v5e / v6e class: 128 MiB physical VMEM -> bigger tiles, raise scoped limit.
        return (4 * 1024 * 1024, 64 * 1024 * 1024, False)
    # Unknown backend: safe defaults, leave the scoped VMEM limit alone.
    return (2 * 1024 * 1024, None, False)


def _pack_group(C, rows):
    """How many consecutive rows to fold into one lane-dense packed row."""
    if C % 128 == 0:
        return 1
    g = math.lcm(C, 128) // C
    if g <= 1 or g > _MAX_PACK_GROUP or g * C > _MAX_PACK_WIDTH:
        return 1
    if rows % g != 0:
        # TODO(synk): pad rows to a multiple of g (extra copy) instead of falling back.
        return 1
    return g


def _default_tile_rows(rows, row_bytes, target_bytes, pack):
    if rows <= pack:
        return rows                        # single block == full array (always legal)
    tile = target_bytes // max(1, row_bytes)
    tile = max(pack, min(_MAX_TILE_ROWS, tile))
    tile = (tile // pack) * pack           # sublane-packing aligned
    rows_up = ((rows + pack - 1) // pack) * pack
    tile = min(tile, rows_up)
    # Guarantee >= 2 grid steps so ("parallel",) can shard across v7x's 2 TensorCores.
    if tile >= rows:
        half = -(-rows // 2)
        half = ((half + pack - 1) // pack) * pack
        if half < rows:
            tile = half
    return max(pack, tile)


def _biasfree_ln_kernel(x_ref, w_ref, o_ref, *, seg_width, num_segs, single_pass):
    # x_ref: (tile_rows, num_segs * seg_width) lane-dense tile; each packed row holds
    # num_segs original rows of seg_width channels.  w_ref: (1, num_segs * seg_width).
    x32 = x_ref[...].astype(jnp.float32)          # no-op when x is already f32
    outs = []
    for s in range(num_segs):                     # static unroll; num_segs is small
        seg = x32[:, s * seg_width:(s + 1) * seg_width]
        mu = jnp.mean(seg, axis=-1, keepdims=True)
        if single_pass:
            # var = E[x^2] - E[x]^2 (fewer full-width VALU ops on v7x); clamp guards
            # against tiny negative values from cancellation.
            var = jnp.maximum(
                jnp.mean(seg * seg, axis=-1, keepdims=True) - mu * mu, 0.0)
        else:
            var = jnp.mean(jnp.square(seg - mu), axis=-1, keepdims=True)  # unbiased=False
        outs.append(seg * lax.rsqrt(var + EPS))   # x (NOT x - mu) scaled: bias-free LN
    y = outs[0] if num_segs == 1 else jnp.concatenate(outs, axis=-1)
    o_ref[...] = (y * w_ref[...].astype(jnp.float32)).astype(o_ref.dtype)


@functools.partial(jax.jit, static_argnames=("tile_rows",))
def biasfree_layernorm(x, weight, *, tile_rows=None):
    """x: (..., C); weight: (C,). Returns same shape/dtype as x."""
    orig_shape = x.shape
    C = orig_shape[-1]
    rows = 1
    for d in orig_shape[:-1]:
        rows *= d

    target_tile_bytes, vmem_limit_bytes, single_pass = _chip_config()
    itemsize = jnp.dtype(x.dtype).itemsize
    pack = _sublane_pack(x.dtype)

    g = _pack_group(C, rows)
    P = g * C
    rows_p = rows // g

    if tile_rows is None:
        tile_rows = _default_tile_rows(rows_p, P * itemsize, target_tile_bytes, pack)

    # Lane packing: (rows, C) -> (rows/g, g*C) — pure row-major reshape, keeps
    # DMAs and stores lane-dense when C is not a multiple of 128.
    x2d = x.reshape(rows_p, P)
    w2d = jnp.tile(weight.reshape(1, C), (1, g)) if g > 1 else weight.reshape(1, C)

    grid = (pl.cdiv(rows_p, tile_rows),)   # ragged last block is write-masked by Pallas

    kernel = functools.partial(_biasfree_ln_kernel, seg_width=C, num_segs=g,
                               single_pass=single_pass)

    cost = pl.CostEstimate(
        flops=8 * rows * C,
        transcendentals=rows,
        bytes_accessed=(2 * rows * C + C) * itemsize,
    )

    out = pl.pallas_call(
        kernel,
        out_shape=jax.ShapeDtypeStruct((rows_p, P), x.dtype),
        grid_spec=pltpu.PrefetchScalarGridSpec(
            num_scalar_prefetch=0,
            grid=grid,
            in_specs=[
                pl.BlockSpec((tile_rows, P), lambda i: (i, 0)),
                pl.BlockSpec((1, P), lambda i: (0, 0)),      # weight stays resident
            ],
            out_specs=pl.BlockSpec((tile_rows, P), lambda i: (i, 0)),
        ),
        compiler_params=pltpu.CompilerParams(
            dimension_semantics=("parallel",),   # shard row grid across TCs on v7x
            vmem_limit_bytes=vmem_limit_bytes,
        ),
        cost_estimate=cost,
    )(x2d, w2d)

    return out.reshape(orig_shape)


def biasfree_layernorm_ref(x, weight):
    x32 = x.astype(jnp.float32)
    var = jnp.var(x32, axis=-1, keepdims=True)   # biased (ddof=0) == unbiased=False
    return (x32 / jnp.sqrt(var + EPS) * weight.astype(jnp.float32)).astype(x.dtype)


if __name__ == "__main__":
    key = jax.random.PRNGKey(0)

    # Small demo shape implied by the module: (batch, tokens, channels=normalized_shape).
    B, N, C = 2, 8, 32
    x = jax.random.normal(key, (B, N, C), dtype=jnp.float32)
    weight = jnp.ones((C,), dtype=jnp.float32)   # nn.Parameter(torch.ones(normalized_shape))

    out = jax.block_until_ready(biasfree_layernorm(x, weight))
    assert out.shape == x.shape and out.dtype == x.dtype
    ref = biasfree_layernorm_ref(x, weight)
    assert jnp.max(jnp.abs(out - ref)) < 2e-5, "mismatch vs reference (small)"

    # Larger, row-unaligned shape: exercises lane packing (C=32 -> 128 lanes),
    # the ragged last grid block and the >=2-grid-step split.
    x1 = jax.random.normal(jax.random.PRNGKey(1), (3, 1000, 32), dtype=jnp.float32)
    w1 = jnp.linspace(0.5, 1.5, 32, dtype=jnp.float32)
    o1 = jax.block_until_ready(biasfree_layernorm(x1, w1))
    r1 = biasfree_layernorm_ref(x1, w1)
    assert jnp.max(jnp.abs(o1 - r1)) < 1e-4, "mismatch vs reference (packed)"

    # C already a multiple of 128: plain lane-dense path (no packing).
    x2 = jax.random.normal(jax.random.PRNGKey(2), (2, 300, 256), dtype=jnp.float32)
    w2 = jnp.linspace(0.5, 1.5, 256, dtype=jnp.float32)
    o2 = jax.block_until_ready(biasfree_layernorm(x2, w2))
    r2 = biasfree_layernorm_ref(x2, w2)
    assert jnp.max(jnp.abs(o2 - r2)) < 1e-4, "mismatch vs reference (C%128==0)"

    # bfloat16 input: exercises 16-row sublane alignment and the dtype round trip.
    x3 = jax.random.normal(jax.random.PRNGKey(3), (2, 64, 32), dtype=jnp.bfloat16)
    w3 = jnp.ones((32,), dtype=jnp.bfloat16)
    o3 = jax.block_until_ready(biasfree_layernorm(x3, w3))
    r3 = biasfree_layernorm_ref(x3, w3)
    assert jnp.max(jnp.abs(o3.astype(jnp.float32) - r3.astype(jnp.float32))) < 6e-2, \
        "mismatch vs reference (bf16)"

    print("KERNEL_OK")
</pallas_src>

<mosaic_0001>
module attributes {stable_mosaic.version = 11 : i64} {
  func.func @_biasfree_ln_kernel(%arg0: i32, %arg1: memref<4x128xf32, #tpu.memory_space<vmem>>, %arg2: memref<1x128xf32, #tpu.memory_space<vmem>>, %arg3: memref<4x128xf32, #tpu.memory_space<vmem>>) attributes {dimension_semantics = [#tpu.dimension_semantics<parallel>], iteration_bounds = array<i64: 1>, scalar_prefetch = 0 : i64, scratch_operands = 0 : i64, tpu.core_type = #tpu.core_type<tc>, window_params = [{transform_indices = @transform_0, window_bounds = array<i64: 4, 128>}, {pipeline_mode = #tpu.pipeline_mode<synchronous>, transform_indices = @transform_1, window_bounds = array<i64: 1, 128>}, {transform_indices = @transform_2, window_bounds = array<i64: 4, 128>}]} {
    %c0 = arith.constant 0 : index
    %c0_0 = arith.constant 0 : index
    %0 = vector.load %arg1[%c0, %c0_0] : memref<4x128xf32, #tpu.memory_space<vmem>>, vector<4x128xf32>
    %1 = vector.extract_strided_slice %0 {offsets = [0, 0], sizes = [4, 32], strides = [1, 1]} : vector<4x128xf32> to vector<4x32xf32>
    %cst = arith.constant dense<0.000000e+00> : vector<4xf32>
    %2 = vector.multi_reduction <add>, %1, %cst [1] : vector<4x32xf32> to vector<4xf32>
    %3 = vector.shape_cast %2 : vector<4xf32> to vector<4x1xf32>
    %cst_1 = arith.constant 3.200000e+01 : f32
    %4 = vector.broadcast %cst_1 : f32 to vector<4x1xf32>
    %5 = arith.divf %3, %4 : vector<4x1xf32>
    %6 = vector.broadcast %5 : vector<4x1xf32> to vector<4x32xf32>
    %7 = arith.subf %1, %6 : vector<4x32xf32>
    %8 = arith.mulf %7, %7 : vector<4x32xf32>
    %cst_2 = arith.constant dense<0.000000e+00> : vector<4xf32>
    %9 = vector.multi_reduction <add>, %8, %cst_2 [1] : vector<4x32xf32> to vector<4xf32>
    %10 = vector.shape_cast %9 : vector<4xf32> to vector<4x1xf32>
    %cst_3 = arith.constant 3.200000e+01 : f32
    %11 = vector.broadcast %cst_3 : f32 to vector<4x1xf32>
    %12 = arith.divf %10, %11 : vector<4x1xf32>
    %cst_4 = arith.constant 9.99999974E-6 : f32
    %13 = vector.broadcast %cst_4 : f32 to vector<4x1xf32>
    %14 = arith.addf %12, %13 : vector<4x1xf32>
    %15 = math.rsqrt %14 : vector<4x1xf32>
    %16 = vector.broadcast %15 : vector<4x1xf32> to vector<4x32xf32>
    %17 = arith.mulf %1, %16 : vector<4x32xf32>
    %18 = vector.extract_strided_slice %0 {offsets = [0, 32], sizes = [4, 32], strides = [1, 1]} : vector<4x128xf32> to vector<4x32xf32>
    %cst_5 = arith.constant dense<0.000000e+00> : vector<4xf32>
    %19 = vector.multi_reduction <add>, %18, %cst_5 [1] : vector<4x32xf32> to vector<4xf32>
    %20 = vector.shape_cast %19 : vector<4xf32> to vector<4x1xf32>
    %cst_6 = arith.constant 3.200000e+01 : f32
    %21 = vector.broadcast %cst_6 : f32 to vector<4x1xf32>
    %22 = arith.divf %20, %21 : vector<4x1xf32>
    %23 = vector.broadcast %22 : vector<4x1xf32> to vector<4x32xf32>
    %24 = arith.subf %18, %23 : vector<4x32xf32>
    %25 = arith.mulf %24, %24 : vector<4x32xf32>
    %cst_7 = arith.constant dense<0.000000e+00> : vector<4xf32>
    %26 = vector.multi_reduction <add>, %25, %cst_7 [1] : vector<4x32xf32> to vector<4xf32>
    %27 = vector.shape_cast %26 : vector<4xf32> to vector<4x1xf32>
    %cst_8 = arith.constant 3.200000e+01 : f32
    %28 = vector.broadcast %cst_8 : f32 to vector<4x1xf32>
    %29 = arith.divf %27, %28 : vector<4x1xf32>
    %cst_9 = arith.constant 9.99999974E-6 : f32
    %30 = vector.broadcast %cst_9 : f32 to vector<4x1xf32>
    %31 = arith.addf %29, %30 : vector<4x1xf32>
    %32 = math.rsqrt %31 : vector<4x1xf32>
    %33 = vector.broadcast %32 : vector<4x1xf32> to vector<4x32xf32>
    %34 = arith.mulf %18, %33 : vector<4x32xf32>
    %35 = vector.extract_strided_slice %0 {offsets = [0, 64], sizes = [4, 32], strides = [1, 1]} : vector<4x128xf32> to vector<4x32xf32>
    %cst_10 = arith.constant dense<0.000000e+00> : vector<4xf32>
    %36 = vector.multi_reduction <add>, %35, %cst_10 [1] : vector<4x32xf32> to vector<4xf32>
    %37 = vector.shape_cast %36 : vector<4xf32> to vector<4x1xf32>
    %cst_11 = arith.constant 3.200000e+01 : f32
    %38 = vector.broadcast %cst_11 : f32 to vector<4x1xf32>
    %39 = arith.divf %37, %38 : vector<4x1xf32>
    %40 = vector.broadcast %39 : vector<4x1xf32> to vector<4x32xf32>
    %41 = arith.subf %35, %40 : vector<4x32xf32>
    %42 = arith.mulf %41, %41 : vector<4x32xf32>
    %cst_12 = arith.constant dense<0.000000e+00> : vector<4xf32>
    %43 = vector.multi_reduction <add>, %42, %cst_12 [1] : vector<4x32xf32> to vector<4xf32>
    %44 = vector.shape_cast %43 : vector<4xf32> to vector<4x1xf32>
    %cst_13 = arith.constant 3.200000e+01 : f32
    %45 = vector.broadcast %cst_13 : f32 to vector<4x1xf32>
    %46 = arith.divf %44, %45 : vector<4x1xf32>
    %cst_14 = arith.constant 9.99999974E-6 : f32
    %47 = vector.broadcast %cst_14 : f32 to vector<4x1xf32>
    %48 = arith.addf %46, %47 : vector<4x1xf32>
    %49 = math.rsqrt %48 : vector<4x1xf32>
    %50 = vector.broadcast %49 : vector<4x1xf32> to vector<4x32xf32>
    %51 = arith.mulf %35, %50 : vector<4x32xf32>
    %52 = vector.extract_strided_slice %0 {offsets = [0, 96], sizes = [4, 32], strides = [1, 1]} : vector<4x128xf32> to vector<4x32xf32>
    %cst_15 = arith.constant dense<0.000000e+00> : vector<4xf32>
    %53 = vector.multi_reduction <add>, %52, %cst_15 [1] : vector<4x32xf32> to vector<4xf32>
    %54 = vector.shape_cast %53 : vector<4xf32> to vector<4x1xf32>
    %cst_16 = arith.constant 3.200000e+01 : f32
    %55 = vector.broadcast %cst_16 : f32 to vector<4x1xf32>
    %56 = arith.divf %54, %55 : vector<4x1xf32>
    %57 = vector.broadcast %56 : vector<4x1xf32> to vector<4x32xf32>
    %58 = arith.subf %52, %57 : vector<4x32xf32>
    %59 = arith.mulf %58, %58 : vector<4x32xf32>
    %cst_17 = arith.constant dense<0.000000e+00> : vector<4xf32>
    %60 = vector.multi_reduction <add>, %59, %cst_17 [1] : vector<4x32xf32> to vector<4xf32>
    %61 = vector.shape_cast %60 : vector<4xf32> to vector<4x1xf32>
    %cst_18 = arith.constant 3.200000e+01 : f32
    %62 = vector.broadcast %cst_18 : f32 to vector<4x1xf32>
    %63 = arith.divf %61, %62 : vector<4x1xf32>
    %cst_19 = arith.constant 9.99999974E-6 : f32
    %64 = vector.broadcast %cst_19 : f32 to vector<4x1xf32>
    %65 = arith.addf %63, %64 : vector<4x1xf32>
    %66 = math.rsqrt %65 : vector<4x1xf32>
    %67 = vector.broadcast %66 : vector<4x1xf32> to vector<4x32xf32>
    %68 = arith.mulf %52, %67 : vector<4x32xf32>
    %69 = tpu.concatenate %17, %34, %51, %68 in 1 : vector<4x32xf32>, vector<4x32xf32>, vector<4x32xf32>, vector<4x32xf32> -> vector<4x128xf32>
    %c0_20 = arith.constant 0 : index
    %c0_21 = arith.constant 0 : index
    %70 = vector.load %arg2[%c0_20, %c0_21] : memref<1x128xf32, #tpu.memory_space<vmem>>, vector<1x128xf32>
    %71 = vector.broadcast %70 : vector<1x128xf32> to vector<4x128xf32>
    %72 = arith.mulf %69, %71 : vector<4x128xf32>
    %c0_22 = arith.constant 0 : index
    %c0_23 = arith.constant 0 : index
    %73 = vector.load %arg3[%c0_22, %c0_23] : memref<4x128xf32, #tpu.memory_space<vmem>>, vector<4x128xf32>
    tpu.vector_store %arg3[%c0_22, %c0_23], %72 {strides = array<i32>} : memref<4x128xf32, #tpu.memory_space<vmem>>, vector<4x128xf32>,
    return
  }
  func.func @transform_0(%arg0: i32) -> (i32, i32) {
    %c0_i32 = arith.constant 0 : i32
    %c0_i32_0 = arith.constant 0 : i32
    return %arg0, %c0_i32 : i32, i32
  }
  func.func @transform_1(%arg0: i32) -> (i32, i32) {
    %c0_i32 = arith.constant 0 : i32
    %c0_i32_0 = arith.constant 0 : i32
    %c0_i32_1 = arith.constant 0 : i32
    return %c0_i32, %c0_i32_0 : i32, i32
  }
  func.func @transform_2(%arg0: i32) -> (i32, i32) {
    %c0_i32 = arith.constant 0 : i32
    %c0_i32_0 = arith.constant 0 : i32
    return %arg0, %c0_i32 : i32, i32
  }
}

</mosaic_0001>

<bundles_post_ra>
// kernel: biasfree_layernorm.1
= control target key start
LH: loop header
LB: loop body
LE: loop exit
PB: predicated region body
PF: predicated region fallthrough
CT: control target
= control target key end

     0   :  { %s119_s11 = smov 96   ;;  %s120_s12 = smov 32   ;;  %vm12_vm0 = vcmask 257024   ;;  %vm88_vm1 = vcmask 261120   ;;  %vm90_vm2 = vcmask 523264   ;;  %vm92_vm3 = vcmask 785408   ;;  %s168_s0 = inlined_call_operand.vmem [shape: f32[4,128], index: 0, kind: input, shape index: {}]   ;;  %s169_s1 = inlined_call_operand.vmem [shape: f32[1,128], index: 1, kind: input, shape index: {}]   ;;  %s170_s2 = inlined_call_operand.vmem [shape: f32[4,128], index: 2, kind: output, shape index: {}]  }
   0x1   :  { %v140_v0 = vld [vmem:[%s168_s0] sm:$0xf]  ;;  %s121_s13 = smov 64  }
   0x2   :  { %28 = vrot.lane.b32.xlu0 %v140_v0, %s119_s11  ;;  %68 = vrot.lane.b32.xlu1 %v140_v0, %s120_s12  ;;  %v13_v3 = vsel %vm12_vm0, %v140_v0, 0.0  ;;  %v107_v51 = vld [vmem:[%s169_s1] ss:$0 sm:$0xff] }
   0x6   :  { %48 = vrot.lane.b32.xlu0 %v140_v0, %s121_s13 }
  0x74   :  { %v29_v1 = vpop.permute.xlu0 %28  ;;  %v69_v5 = vpop.permute.xlu1 %68 }
  0x75   :  { %v31_v2 = vsel %vm12_vm0, %v29_v1, 0.0  ;;  %v71_v7 = vsel %vm12_vm0, %v69_v5, 0.0 }
  0x76   :  { %32 = vadd.xlane.f32.xlu1 %v31_v2 }
  0x78   :  { %v49_v4 = vpop.permute.xlu0 %48 }
  0x79   :  { %v51_v6 = vsel %vm12_vm0, %v49_v4, 0.0 }
  0x7a   :  { %52 = vadd.xlane.f32.xlu0 %v51_v6  ;;  %14 = vadd.xlane.f32.xlu1 %v13_v3 }
  0x7e   :  { %72 = vadd.xlane.f32.xlu0 %v71_v7 }
 0x103   :  { %v33_v8 = vpop.xlane.xlu1 %32 }
 0x104   :  { %v34_v9 = vmul.f32 0.03125, %v33_v8 }
 0x106   :  { %v35_v10 = vsub.f32 %v140_v0, %v34_v9 }
 0x107   :  { %v53_v11 = vpop.xlane.xlu0 %52  ;;  %v15_v20 = vpop.xlane.xlu1 %14 }
 0x108   :  { %v36_v12 = vmul.f32 %v35_v10, %v35_v10  ;;  %v54_v13 = vmul.f32 0.03125, %v53_v11  ;;  %v17_v21 = vmul.f32 0.03125, %v15_v20 }
 0x10a   :  { %v55_v14 = vsub.f32 %v140_v0, %v54_v13  ;;  %38 = vrot.lane.b32.xlu0 %v36_v12, %s119_s11  ;;  %v18_v22 = vsub.f32 %v140_v0, %v17_v21 }
 0x10b   :  { %v73_v15 = vpop.xlane.xlu0 %72 }
 0x10c   :  { %v56_v16 = vmul.f32 %v55_v14, %v55_v14  ;;  %v74_v17 = vmul.f32 0.03125, %v73_v15  ;;  %v19_v23 = vmul.f32 %v18_v22, %v18_v22 }
 0x10e   :  { %v75_v18 = vsub.f32 %v140_v0, %v74_v17  ;;  %58 = vrot.lane.b32.xlu1 %v56_v16, %s121_s13  ;;  %v20_v24 = vsel %vm12_vm0, %v19_v23, 0.0 }
 0x110   :  { %v76_v19 = vmul.f32 %v75_v18, %v75_v18 }
 0x112   :  { %78 = vrot.lane.b32.xlu1 %v76_v19, %s120_s12 }
 0x129   :  { %21 = vadd.xlane.f32.xlu0 %v20_v24 }
 0x17c   :  { %v39_v25 = vpop.permute.xlu0 %38 }
 0x17d   :  { %v41_v26 = vsel %vm12_vm0, %v39_v25, 0.0 }
 0x17e   :  { %42 = vadd.xlane.f32.xlu1 %v41_v26 }
 0x180   :  { %v59_v27 = vpop.permute.xlu1 %58 }
 0x181   :  { %v61_v28 = vsel %vm12_vm0, %v59_v27, 0.0 }
 0x182   :  { %62 = vadd.xlane.f32.xlu0 %v61_v28 }
 0x184   :  { %v79_v29 = vpop.permute.xlu1 %78 }
 0x185   :  { %v81_v30 = vsel %vm12_vm0, %v79_v29, 0.0 }
 0x186   :  { %82 = vadd.xlane.f32.xlu0 %v81_v30 }
 0x1b6   :  { %v22_v31 = vpop.xlane.xlu0 %21 }
 0x1b7   :  { %v23_v32 = vmul.f32 0.03125, %v22_v31 }
 0x1b9   :  { %v24_v35 = vadd.f32 1e-05, %v23_v32 }
 0x1bb   :  { %111 = vrsqrt.f32 %v24_v35 }
 0x1c5   :  { %v112_v43 = vpop.eup %111 }
 0x1c6   :  { %v26_v46 = vmul.f32 %v112_v43, %v140_v0 }
 0x20b   :  { %v43_v33 = vpop.xlane.xlu1 %42 }
 0x20c   :  { %v44_v34 = vmul.f32 0.03125, %v43_v33 }
 0x20e   :  { %v45_v36 = vadd.f32 1e-05, %v44_v34 }
 0x20f   :  { %v63_v37 = vpop.xlane.xlu0 %62 }
 0x210   :  { %v64_v38 = vmul.f32 0.03125, %v63_v37  ;;  %113 = vrsqrt.f32 %v45_v36 }
 0x212   :  { %v65_v39 = vadd.f32 1e-05, %v64_v38 }
 0x213   :  { %v83_v40 = vpop.xlane.xlu0 %82 }
 0x214   :  { %115 = vrsqrt.f32 %v65_v39  ;;  %v84_v41 = vmul.f32 0.03125, %v83_v40 }
 0x216   :  { %v85_v42 = vadd.f32 1e-05, %v84_v41 }
 0x218   :  { %117 = vrsqrt.f32 %v85_v42 }
 0x21a   :  { %v114_v44 = vpop.eup %113 }
 0x21b   :  { %v47_v47 = vmul.f32 %v114_v44, %v140_v0 }
 0x21d   :  { %v89_v50 = vsel %vm88_vm1, %v26_v46, %v47_v47 }
 0x21e   :  { %v116_v45 = vpop.eup %115 }
 0x21f   :  { %v67_v48 = vmul.f32 %v116_v45, %v140_v0 }
 0x221   :  { %v91_v53 = vsel %vm90_vm2, %v89_v50, %v67_v48 }
 0x222   :  { %v118_v49 = vpop.eup %117 }
 0x223   :  { %v87_v52 = vmul.f32 %v118_v49, %v140_v0 }
 0x225   :  { %v93_v54 = vsel %vm92_vm3, %v91_v53, %v87_v52 }
 0x226   :  { %v101_v55 = vmul.f32 %v107_v51, %v93_v54 }
 0x228   :  { %102 = vst [vmem:[%s170_s2] sm:$0xf] %v101_v55 }

</bundles_post_ra>
